<compile_context>
chip_gen: v5e
topology: v5e:2x2
jax: 0.10.0
libtpu: 0.0.40
codegen_flags: <defaults>
</compile_context>

<pallas_src>
import jax
import jax.numpy as jnp
from jax import lax
from jax.experimental import pallas as pl
from jax.experimental.pallas import tpu as pltpu


def _make_kernel(tb, hw_true, thw, needs_mask):
    inv_hw = 1.0 / float(hw_true)

    def kernel(x_ref, w1t_ref, b1_ref, w2t_ref, b2_ref, o_ref, sum_sc, max_sc):
        hw_idx = pl.program_id(1)

        @pl.when(hw_idx == 0)
        def _init():
            sum_sc[...] = jnp.zeros_like(sum_sc)
            max_sc[...] = jnp.full_like(max_sc, -jnp.inf)

        x = x_ref[...]                                     # (TB, C_pad, THW), native dtype

        # Running sum with f32 accumulation (zero HW/channel padding is exact).
        sum_sc[...] += jnp.sum(x, axis=-1, dtype=jnp.float32)

        # Running max; mask padded HW lanes only when padding exists (static).
        if needs_mask:
            col = hw_idx * thw + lax.broadcasted_iota(jnp.int32, x.shape, 2)
            neg = jnp.asarray(-jnp.inf, dtype=x.dtype)
            x = jnp.where(col < hw_true, x, neg)
        max_sc[...] = jnp.maximum(max_sc[...],
                                  jnp.max(x, axis=-1).astype(jnp.float32))

        @pl.when(hw_idx == pl.num_programs(1) - 1)
        def _finalize():
            avg = sum_sc[...] * inv_hw                     # (TB, C_pad) f32
            mx = max_sc[...]                               # (TB, C_pad) f32
            pooled = jnp.concatenate([avg, mx], axis=0)    # (2*TB, C_pad)

            w1t = w1t_ref[...]                             # (C_pad, hidden)
            w2t = w2t_ref[...]                             # (hidden, C_pad)
            b1 = b1_ref[...].astype(jnp.float32)           # (1, hidden)
            b2 = b2_ref[...].astype(jnp.float32)           # (1, C_pad)

            # One fused MLP pass over both pooled paths (native-dtype MXU
            # operands, f32 accumulation).
            h = jnp.dot(pooled.astype(w1t.dtype), w1t,
                        preferred_element_type=jnp.float32) + b1
            h = jnp.maximum(h, 0.0)                        # ReLU
            y = jnp.dot(h.astype(w2t.dtype), w2t,
                        preferred_element_type=jnp.float32) + b2

            logits = y[:tb] + y[tb:]                       # mlp(avg) + mlp(max)
            o_ref[...] = jax.nn.sigmoid(logits).astype(o_ref.dtype)

    return kernel


def channel_attention(x, w1, b1, w2, b2, *, max_tile_bytes=2 * 1024 * 1024):
    """CBAM channel attention.

    x:  (B, C, H, W)   NCHW input
    w1: (hidden, C)    fc1.weight squeezed from (hidden, C, 1, 1)
    b1: (hidden,)      fc1.bias
    w2: (C, hidden)    fc2.weight squeezed from (C, hidden, 1, 1)
    b2: (C,)           fc2.bias
    Returns the attention map of shape (B, C, 1, 1), matching the PyTorch module.
    """
    B, C, H, W = x.shape
    hidden = w1.shape[0]
    HW = H * W
    itemsize = jnp.dtype(x.dtype).itemsize

    # Channels padded to a sublane multiple of 8 (weight lane dims are exempt
    # because their blocks cover the full array).
    C_pad = -(-C // 8) * 8

    # Batch rows per grid step: whole batch when small, else 8 per step (keeps
    # multiple "parallel" steps for megacore).  Shrink further if one lane-tile
    # of x would already exceed the VMEM tile budget (very large C).
    TB = B if B <= 8 else 8
    while TB > 1 and TB * C_pad * itemsize * 128 > max_tile_bytes:
        TB = max(1, TB // 2)
    B_pad = -(-B // TB) * TB

    # HW tile: lane aligned (x128), as large as the tile budget allows.  The
    # kernel is HBM bound on reading x; ~2 MiB tiles are on the bandwidth
    # roofline plateau and stay well inside scoped VMEM once double-buffered.
    bytes_per_lane_tile = TB * C_pad * itemsize * 128
    lane_tiles_budget = max(1, max_tile_bytes // bytes_per_lane_tile)
    lane_tiles_full = -(-HW // 128)
    THW = 128 * min(lane_tiles_budget, lane_tiles_full)
    HW_pad = -(-HW // THW) * THW
    needs_mask = HW_pad != HW

    # Reshape is free (contiguous); only materialize padding when required so
    # aligned shapes never pay an extra HBM copy of x.
    x_flat = x.reshape(B, C, HW)
    if (B_pad, C_pad, HW_pad) != (B, C, HW):
        x_flat = jnp.pad(x_flat, ((0, B_pad - B), (0, C_pad - C), (0, HW_pad - HW)))

    # 1x1 convs == matmuls; zero-pad channel dims so padded channels are inert.
    w1t = w1.T if C_pad == C else jnp.pad(w1.T, ((0, C_pad - C), (0, 0)))   # (C_pad, hidden)
    w2t = w2.T if C_pad == C else jnp.pad(w2.T, ((0, 0), (0, C_pad - C)))   # (hidden, C_pad)
    b1r = b1.reshape(1, hidden)
    b2r = b2.reshape(1, C)
    if C_pad != C:
        b2r = jnp.pad(b2r, ((0, 0), (0, C_pad - C)))

    grid = (B_pad // TB, HW_pad // THW)
    kernel = _make_kernel(TB, HW, THW, needs_mask)

    out = pl.pallas_call(
        kernel,
        out_shape=jax.ShapeDtypeStruct((B_pad, C_pad), x.dtype),
        grid_spec=pltpu.PrefetchScalarGridSpec(
            num_scalar_prefetch=0,
            grid=grid,
            in_specs=[
                pl.BlockSpec((TB, C_pad, THW), lambda b, hw: (b, 0, hw)),
                pl.BlockSpec((C_pad, hidden), lambda b, hw: (0, 0)),
                pl.BlockSpec((1, hidden), lambda b, hw: (0, 0)),
                pl.BlockSpec((hidden, C_pad), lambda b, hw: (0, 0)),
                pl.BlockSpec((1, C_pad), lambda b, hw: (0, 0)),
            ],
            out_specs=pl.BlockSpec((TB, C_pad), lambda b, hw: (b, 0)),
            scratch_shapes=[
                pltpu.VMEM((TB, C_pad), jnp.float32),   # running sum
                pltpu.VMEM((TB, C_pad), jnp.float32),   # running max
            ],
        ),
        compiler_params=pltpu.CompilerParams(
            dimension_semantics=("parallel", "arbitrary"),
        ),
    )(x_flat, w1t, b1r, w2t, b2r)

    if (B_pad, C_pad) != (B, C):
        out = out[:B, :C]
    return out.reshape(B, C, 1, 1)


def reference_channel_attention(x, w1, b1, w2, b2):
    """Pure-JAX reference matching the PyTorch forward."""
    avg = jnp.mean(x, axis=(2, 3))     # (B, C)
    mx = jnp.max(x, axis=(2, 3))       # (B, C)

    def mlp(v):
        h = jnp.maximum(v @ w1.T + b1, 0.0)
        return h @ w2.T + b2

    return jax.nn.sigmoid(mlp(avg) + mlp(mx)).reshape(x.shape[0], x.shape[1], 1, 1)


if __name__ == "__main__":
    # Small shapes consistent with the module (reduction_ratio=4 so hidden >= 1).
    B, C, H, W = 2, 32, 16, 16
    reduction_ratio = 4
    hidden = C // reduction_ratio

    key = jax.random.PRNGKey(0)
    kx, k1, k2, k3, k4 = jax.random.split(key, 5)

    x = jax.random.normal(kx, (B, C, H, W), dtype=jnp.float32)
    w1 = jax.random.normal(k1, (hidden, C), dtype=jnp.float32) * 0.1   # fc1.weight (hidden, C, 1, 1)
    b1 = jax.random.normal(k2, (hidden,), dtype=jnp.float32) * 0.1     # fc1.bias
    w2 = jax.random.normal(k3, (C, hidden), dtype=jnp.float32) * 0.1   # fc2.weight (C, hidden, 1, 1)
    b2 = jax.random.normal(k4, (C,), dtype=jnp.float32) * 0.1          # fc2.bias

    out = channel_attention(x, w1, b1, w2, b2)
    out = jax.block_until_ready(out)

    ref = reference_channel_attention(x, w1, b1, w2, b2)
    assert out.shape == (B, C, 1, 1), out.shape
    assert jnp.allclose(out, ref, atol=2e-5, rtol=2e-5), "mismatch vs reference"

    print("KERNEL_OK")
</pallas_src>

<mosaic_0001>
module attributes {stable_mosaic.version = 11 : i64} {
  func.func @kernel(%arg0: i32, %arg1: i32, %arg2: memref<2x32x256xf32, #tpu.memory_space<vmem>>, %arg3: memref<32x8xf32, #tpu.memory_space<vmem>>, %arg4: memref<1x8xf32, #tpu.memory_space<vmem>>, %arg5: memref<8x32xf32, #tpu.memory_space<vmem>>, %arg6: memref<1x32xf32, #tpu.memory_space<vmem>>, %arg7: memref<2x32xf32, #tpu.memory_space<vmem>>, %arg8: memref<2x32xf32, #tpu.memory_space<vmem>>, %arg9: memref<2x32xf32, #tpu.memory_space<vmem>>) attributes {dimension_semantics = [#tpu.dimension_semantics<parallel>, #tpu.dimension_semantics<arbitrary>], iteration_bounds = array<i64: 1, 1>, scalar_prefetch = 0 : i64, scratch_operands = 2 : i64, tpu.core_type = #tpu.core_type<tc>, window_params = [{transform_indices = @transform_0, window_bounds = array<i64: 2, 32, 256>}, {pipeline_mode = #tpu.pipeline_mode<synchronous>, transform_indices = @transform_1, window_bounds = array<i64: 32, 8>}, {pipeline_mode = #tpu.pipeline_mode<synchronous>, transform_indices = @transform_2, window_bounds = array<i64: 1, 8>}, {pipeline_mode = #tpu.pipeline_mode<synchronous>, transform_indices = @transform_3, window_bounds = array<i64: 8, 32>}, {pipeline_mode = #tpu.pipeline_mode<synchronous>, transform_indices = @transform_4, window_bounds = array<i64: 1, 32>}, {transform_indices = @transform_5, window_bounds = array<i64: 2, 32>}]} {
    %c0_i32 = arith.constant 0 : i32
    %0 = arith.cmpi eq, %arg1, %c0_i32 : i32
    %1 = arith.extui %0 : i1 to i32
    %c0_i32_0 = arith.constant 0 : i32
    %2 = arith.cmpi ne, %1, %c0_i32_0 : i32
    scf.if %2 {
      %cst_14 = arith.constant 0.000000e+00 : f32
      %15 = vector.broadcast %cst_14 : f32 to vector<2x32xf32>
      %c0_15 = arith.constant 0 : index
      %c0_16 = arith.constant 0 : index
      %16 = vector.load %arg8[%c0_15, %c0_16] : memref<2x32xf32, #tpu.memory_space<vmem>>, vector<2x32xf32>
      tpu.vector_store %arg8[%c0_15, %c0_16], %15 {strides = array<i32>} : memref<2x32xf32, #tpu.memory_space<vmem>>, vector<2x32xf32>,
      %cst_17 = arith.constant 0xFF800000 : f32
      %17 = vector.broadcast %cst_17 : f32 to vector<2x32xf32>
      %c0_18 = arith.constant 0 : index
      %c0_19 = arith.constant 0 : index
      %18 = vector.load %arg9[%c0_18, %c0_19] : memref<2x32xf32, #tpu.memory_space<vmem>>, vector<2x32xf32>
      tpu.vector_store %arg9[%c0_18, %c0_19], %17 {strides = array<i32>} : memref<2x32xf32, #tpu.memory_space<vmem>>, vector<2x32xf32>,
    } else {
    }
    %c0 = arith.constant 0 : index
    %c0_1 = arith.constant 0 : index
    %c0_2 = arith.constant 0 : index
    %3 = vector.load %arg2[%c0, %c0_1, %c0_2] : memref<2x32x256xf32, #tpu.memory_space<vmem>>, vector<2x32x256xf32>
    %c0_3 = arith.constant 0 : index
    %c0_4 = arith.constant 0 : index
    %4 = vector.load %arg8[%c0_3, %c0_4] : memref<2x32xf32, #tpu.memory_space<vmem>>, vector<2x32xf32>
    %cst = arith.constant dense<0.000000e+00> : vector<2x32xf32>
    %5 = vector.multi_reduction <add>, %3, %cst [2] : vector<2x32x256xf32> to vector<2x32xf32>
    %6 = arith.addf %4, %5 : vector<2x32xf32>
    %c0_5 = arith.constant 0 : index
    %c0_6 = arith.constant 0 : index
    %7 = vector.load %arg8[%c0_5, %c0_6] : memref<2x32xf32, #tpu.memory_space<vmem>>, vector<2x32xf32>
    tpu.vector_store %arg8[%c0_5, %c0_6], %6 {strides = array<i32>} : memref<2x32xf32, #tpu.memory_space<vmem>>, vector<2x32xf32>,
    %c0_7 = arith.constant 0 : index
    %c0_8 = arith.constant 0 : index
    %8 = vector.load %arg9[%c0_7, %c0_8] : memref<2x32xf32, #tpu.memory_space<vmem>>, vector<2x32xf32>
    %cst_9 = arith.constant dense<0xFF800000> : vector<2x32xf32>
    %9 = vector.multi_reduction <maximumf>, %3, %cst_9 [2] : vector<2x32x256xf32> to vector<2x32xf32>
    %10 = arith.maximumf %8, %9 : vector<2x32xf32>
    %c0_10 = arith.constant 0 : index
    %c0_11 = arith.constant 0 : index
    %11 = vector.load %arg9[%c0_10, %c0_11] : memref<2x32xf32, #tpu.memory_space<vmem>>, vector<2x32xf32>
    tpu.vector_store %arg9[%c0_10, %c0_11], %10 {strides = array<i32>} : memref<2x32xf32, #tpu.memory_space<vmem>>, vector<2x32xf32>,
    %c0_i32_12 = arith.constant 0 : i32
    %12 = arith.cmpi eq, %arg1, %c0_i32_12 : i32
    %13 = arith.extui %12 : i1 to i32
    %c0_i32_13 = arith.constant 0 : i32
    %14 = arith.cmpi ne, %13, %c0_i32_13 : i32
    scf.if %14 {
      %c0_14 = arith.constant 0 : index
      %c0_15 = arith.constant 0 : index
      %15 = vector.load %arg8[%c0_14, %c0_15] : memref<2x32xf32, #tpu.memory_space<vmem>>, vector<2x32xf32>
      %cst_16 = arith.constant 3.906250e-03 : f32
      %16 = vector.broadcast %cst_16 : f32 to vector<2x32xf32>
      %17 = arith.mulf %15, %16 : vector<2x32xf32>
      %c0_17 = arith.constant 0 : index
      %c0_18 = arith.constant 0 : index
      %18 = vector.load %arg9[%c0_17, %c0_18] : memref<2x32xf32, #tpu.memory_space<vmem>>, vector<2x32xf32>
      %19 = tpu.concatenate %17, %18 in 0 : vector<2x32xf32>, vector<2x32xf32> -> vector<4x32xf32>
      %c0_19 = arith.constant 0 : index
      %c0_20 = arith.constant 0 : index
      %20 = vector.load %arg3[%c0_19, %c0_20] : memref<32x8xf32, #tpu.memory_space<vmem>>, vector<32x8xf32>
      %c0_21 = arith.constant 0 : index
      %c0_22 = arith.constant 0 : index
      %21 = vector.load %arg5[%c0_21, %c0_22] : memref<8x32xf32, #tpu.memory_space<vmem>>, vector<8x32xf32>
      %c0_23 = arith.constant 0 : index
      %c0_24 = arith.constant 0 : index
      %22 = vector.load %arg4[%c0_23, %c0_24] : memref<1x8xf32, #tpu.memory_space<vmem>>, vector<1x8xf32>
      %c0_25 = arith.constant 0 : index
      %c0_26 = arith.constant 0 : index
      %23 = vector.load %arg6[%c0_25, %c0_26] : memref<1x32xf32, #tpu.memory_space<vmem>>, vector<1x32xf32>
      %cst_27 = arith.constant dense<0.000000e+00> : vector<4x8xf32>
      %24 = tpu.matmul %19, %20, %cst_27 {dimension_numbers = #tpu.dot_dimension_numbers<[1], [0], [0], [1], [0, 0, 1, 1], [], []>} : vector<4x32xf32>, vector<32x8xf32>, vector<4x8xf32> -> vector<4x8xf32>
      %25 = vector.broadcast %22 : vector<1x8xf32> to vector<4x8xf32>
      %26 = arith.addf %24, %25 : vector<4x8xf32>
      %cst_28 = arith.constant 0.000000e+00 : f32
      %27 = vector.broadcast %cst_28 : f32 to vector<4x8xf32>
      %28 = arith.maximumf %26, %27 : vector<4x8xf32>
      %cst_29 = arith.constant dense<0.000000e+00> : vector<4x32xf32>
      %29 = tpu.matmul %28, %21, %cst_29 {dimension_numbers = #tpu.dot_dimension_numbers<[1], [0], [0], [1], [0, 0, 1, 1], [], []>} : vector<4x8xf32>, vector<8x32xf32>, vector<4x32xf32> -> vector<4x32xf32>
      %30 = vector.broadcast %23 : vector<1x32xf32> to vector<4x32xf32>
      %31 = arith.addf %29, %30 : vector<4x32xf32>
      %32 = vector.extract_strided_slice %31 {offsets = [0, 0], sizes = [2, 32], strides = [1, 1]} : vector<4x32xf32> to vector<2x32xf32>
      %33 = vector.extract_strided_slice %31 {offsets = [2, 0], sizes = [2, 32], strides = [1, 1]} : vector<4x32xf32> to vector<2x32xf32>
      %34 = arith.addf %32, %33 : vector<2x32xf32>
      %35 = arith.negf %34 : vector<2x32xf32>
      %36 = math.exp %35 : vector<2x32xf32>
      %cst_30 = arith.constant 1.000000e+00 : f32
      %37 = vector.broadcast %cst_30 : f32 to vector<2x32xf32>
      %38 = arith.addf %37, %36 : vector<2x32xf32>
      %39 = arith.divf %37, %38 : vector<2x32xf32>
      %c0_31 = arith.constant 0 : index
      %c0_32 = arith.constant 0 : index
      %40 = vector.load %arg7[%c0_31, %c0_32] : memref<2x32xf32, #tpu.memory_space<vmem>>, vector<2x32xf32>
      tpu.vector_store %arg7[%c0_31, %c0_32], %39 {strides = array<i32>} : memref<2x32xf32, #tpu.memory_space<vmem>>, vector<2x32xf32>,
    } else {
    }
    return
  }
  func.func @transform_0(%arg0: i32, %arg1: i32) -> (i32, i32, i32) {
    %c0_i32 = arith.constant 0 : i32
    %c0_i32_0 = arith.constant 0 : i32
    return %arg0, %c0_i32, %arg1 : i32, i32, i32
  }
  func.func @transform_1(%arg0: i32, %arg1: i32) -> (i32, i32) {
    %c0_i32 = arith.constant 0 : i32
    %c0_i32_0 = arith.constant 0 : i32
    %c0_i32_1 = arith.constant 0 : i32
    return %c0_i32, %c0_i32_0 : i32, i32
  }
  func.func @transform_2(%arg0: i32, %arg1: i32) -> (i32, i32) {
    %c0_i32 = arith.constant 0 : i32
    %c0_i32_0 = arith.constant 0 : i32
    %c0_i32_1 = arith.constant 0 : i32
    return %c0_i32, %c0_i32_0 : i32, i32
  }
  func.func @transform_3(%arg0: i32, %arg1: i32) -> (i32, i32) {
    %c0_i32 = arith.constant 0 : i32
    %c0_i32_0 = arith.constant 0 : i32
    %c0_i32_1 = arith.constant 0 : i32
    return %c0_i32, %c0_i32_0 : i32, i32
  }
  func.func @transform_4(%arg0: i32, %arg1: i32) -> (i32, i32) {
    %c0_i32 = arith.constant 0 : i32
    %c0_i32_0 = arith.constant 0 : i32
    %c0_i32_1 = arith.constant 0 : i32
    return %c0_i32, %c0_i32_0 : i32, i32
  }
  func.func @transform_5(%arg0: i32, %arg1: i32) -> (i32, i32) {
    %c0_i32 = arith.constant 0 : i32
    %c0_i32_0 = arith.constant 0 : i32
    return %arg0, %c0_i32 : i32, i32
  }
}

</mosaic_0001>

<bundles_post_ra>
// kernel: tpu_custom_call.1
= control target key start
LH: loop header
LB: loop body
LE: loop exit
PB: predicated region body
PF: predicated region fallthrough
CT: control target
= control target key end

     0   :  { %10 = vsyncpa [#allocation5], 0  ;;  %s435_s0 = inlined_call_operand.hbm [shape: f32[2,32,256], index: 0, kind: input, shape index: {}]   ;;  %s436_s1 = inlined_call_operand.vmem [shape: f32[32,8], index: 1, kind: input, shape index: {}]   ;;  %s437_s2 = inlined_call_operand.vmem [shape: f32[1,8], index: 2, kind: input, shape index: {}]   ;;  %s438_s3 = inlined_call_operand.vmem [shape: f32[8,32], index: 3, kind: input, shape index: {}]   ;;  %s439_s4 = inlined_call_operand.vmem [shape: f32[1,32], index: 4, kind: input, shape index: {}]   ;;  %s440_s5 = inlined_call_operand.hbm [shape: f32[2,32], index: 5, kind: output, shape index: {}]  }
   0x1   :  { %11 = vsyncpa [#allocation6], 0  ;;  %s16_s20 = sshll.u32 %s435_s0, 4  ;;  %s353_s21 = smov [#allocation4]   ;;  %s17_s20 = int_to_ptr.hbm [resolvable:$true] %s16_s20 }
   0x2   :  { %s18_s22 = sshll.u32 %s353_s21, 4  ;;  %s354_s23 = smov 256   ;;  %s19_s22 = int_to_ptr.vmem [resolvable:$true] %s18_s22 }
   0x3   :  { %s355_s24 = smov 16  }
   0x4   :  { %24 = dma.hbm_to_vmem [thread:$0]  %s17_s20, 2048, %s19_s22, [#allocation5], %s354_s23, %s354_s23, %s355_s24  }
   0x5   :  { %349 = dma.done.wait [#allocation5], 2048  }
   0x6   :  { %350 = vsyncadd [#allocation5], 4294965248  ;;  %v52_v0 = vld [vmem:[#allocation4 + $0x40] sm:$0xff]  ;;  %v53_v1 = vld [vmem:[#allocation4 + $0x48] sm:$0xff]  ;;  %vm41_vm0 = vcmask 254976   ;;  %v356_v32 = vmov 0.0   ;;  %v93_v46 = vlaneseq }
   0x7   :  { %v44_v2 = vld [vmem:[#allocation4] sm:$0xff]  ;;  %v73_v3 = vadd.f32 %v53_v1, %v52_v0  ;;  %v45_v4 = vld [vmem:[#allocation4 + $0x8] sm:$0xff]  ;;  %v54_v7 = vld [vmem:[#allocation4 + $0x50] sm:$0xff]  ;;  %v134_v18 = vmax.f32 %v52_v0, %v53_v1  ;;  %42 = vst.msk [vmem:[#allocation2] sm:$0x3] %vm41_vm0, %v356_v32  ;;  %v357_v36 = vmov -inf  }
   0x8   :  { %v122_v5 = vmax.f32 %v44_v2, %v45_v4  ;;  %v61_v6 = vadd.f32 %v45_v4, %v44_v2  ;;  %v55_v8 = vld [vmem:[#allocation4 + $0x58] sm:$0xff]  ;;  %v46_v9 = vld [vmem:[#allocation4 + $0x10] sm:$0xff]  ;;  %v48_v14 = vld [vmem:[#allocation4 + $0x20] sm:$0xff]  ;;  %43 = vst.msk [vmem:[#allocation3] sm:$0x3] %vm41_vm0, %v357_v36  ;;  %v94_v48 = vand.u32 127, %v93_v46 }
   0x9   :  { %74 = vadd.xlane.f32.xlu1 %v73_v3  ;;  %v47_v10 = vld [vmem:[#allocation4 + $0x18] sm:$0xff]  ;;  %v76_v11 = vadd.f32 %v55_v8, %v54_v7  ;;  %v49_v15 = vld [vmem:[#allocation4 + $0x28] sm:$0xff]  ;;  %v137_v16 = vmax.f32 %v54_v7, %v55_v8  ;;  %v56_v19 = vld [vmem:[#allocation4 + $0x60] sm:$0xff]  ;;  %vm98_vm1 = vcmask 130112   ;;  %vm102_vm2 = vcmask 195712   ;;  %s276_s13 = sshll.u32 %s440_s5, 4  ;;  %s277_s13 = int_to_ptr.hbm [resolvable:$true] %s276_s13 }
   0xa   :  { %123 = vmax.xlane.f32.xlu2 %v122_v5  ;;  %62 = vadd.xlane.f32.xlu0 %v61_v6  ;;  %v125_v12 = vmax.f32 %v46_v9, %v47_v10  ;;  %v64_v13 = vadd.f32 %v47_v10, %v46_v9  ;;  %v67_v17 = vadd.f32 %v49_v15, %v48_v14  ;;  %v57_v20 = vld [vmem:[#allocation4 + $0x68] sm:$0xff]  ;;  %v58_v24 = vld [vmem:[#allocation4 + $0x70] sm:$0xff]  ;;  %v59_v25 = vld [vmem:[#allocation4 + $0x78] sm:$0xff]  ;;  %v96_v50 = vadd.s32 4294967288, %v94_v48 }
   0xb   :  { %v128_v21 = vmax.f32 %v48_v14, %v49_v15  ;;  %v140_v22 = vmax.f32 %v56_v19, %v57_v20  ;;  %v79_v23 = vadd.f32 %v57_v20, %v56_v19  ;;  %v50_v26 = vld [vmem:[#allocation4 + $0x30] sm:$0xff]  ;;  %v51_v27 = vld [vmem:[#allocation4 + $0x38] sm:$0xff]  ;;  %v82_v28 = vadd.f32 %v59_v25, %v58_v24  ;;  %v184_v45 = vld [vmem:[%s436_s1 + $0x8] sm:$0xff] }
   0xc   :  { %v131_v29 = vmax.f32 %v50_v26, %v51_v27  ;;  %v70_v30 = vadd.f32 %v51_v27, %v50_v26  ;;  %v143_v31 = vmax.f32 %v58_v24, %v59_v25  ;;  %v186_v41 = vld [vmem:[%s436_s1 + $0x18] sm:$0xff]  ;;  %v185_v42 = vld [vmem:[%s436_s1 + $0x10] sm:$0xff]  ;;  %v183_v47 = vld [vmem:[%s436_s1] sm:$0xff]  ;;  %v100_v52 = vadd.s32 4294967280, %v94_v48 }
   0xd   :  { %209 = vmatpush.msra.mxu0 %v186_v41  ;;  %v104_v56 = vadd.s32 4294967272, %v94_v48  ;;  %vm106_vm3 = vcmask 261312   ;;  %vm115_vm4 = vcmask 1041409   ;;  %vm181_vm5 = vcmask 1041408  }
   0xe   :  { %v60_v6 = vld [vmem:[#allocation2] sm:$0x3]  ;;  %vm193_vm6 = vcmask 261120   ;;  %vm221_vm7 = vcmask 64512  }
   0xf   :  { %210 = vmatpush.msra.mxu0 %v185_v42  ;;  %v121_v24 = vld [vmem:[#allocation3] sm:$0x3] }
  0x11   :  { %77 = vadd.xlane.f32.xlu1 %v76_v11  ;;  %211 = vmatpush.msra.mxu0 %v184_v45 }
  0x12   :  { %126 = vmax.xlane.f32.xlu2 %v125_v12  ;;  %65 = vadd.xlane.f32.xlu0 %v64_v13 }
  0x13   :  { %212 = vmatpush.msra.mxu0 %v183_v47 }
  0x19   :  { %138 = vmax.xlane.f32.xlu1 %v137_v16 }
  0x1a   :  { %68 = vadd.xlane.f32.xlu2 %v67_v17  ;;  %135 = vmax.xlane.f32.xlu0 %v134_v18 }
  0x21   :  { %129 = vmax.xlane.f32.xlu1 %v128_v21 }
  0x22   :  { %141 = vmax.xlane.f32.xlu2 %v140_v22  ;;  %80 = vadd.xlane.f32.xlu0 %v79_v23 }
  0x29   :  { %83 = vadd.xlane.f32.xlu1 %v82_v28 }
  0x2a   :  { %132 = vmax.xlane.f32.xlu2 %v131_v29  ;;  %71 = vadd.xlane.f32.xlu0 %v70_v30 }
  0x32   :  { %144 = vmax.xlane.f32.xlu0 %v143_v31 }
  0x7c   :  { %v75_v33 = vpop.xlane.xlu1 %74 }
  0x7d   :  { %v124_v34 = vpop.xlane.xlu2 %123  ;;  %v63_v35 = vpop.xlane.xlu0 %62  ;;  %v108_v54 = vperm.slane %v75_v33, %v94_v48 }
  0x7e   :  { %v95_v60 = vperm.slane %v63_v35, %v94_v48  ;;  %v154_v8 = vperm.slane %v124_v34, %v94_v48  ;;  %v187_v34 = vld [vmem:[%s438_s3] sm:$0xff] }
  0x7f   :  { %240 = vmatpush.msra.mxu1 %v187_v34  ;;  %v295_v35 = vld [vmem:[%s437_s2] ss:$0 sm:$0xff]  ;;  %s358_s2 = smov [#allocation7]  }
  0x80   :  { %s274_s3 = sshll.u32 %s358_s2, 4  ;;  %s275_s3 = int_to_ptr.vmem [resolvable:$true] %s274_s3 }
  0x84   :  { %v78_v37 = vpop.xlane.xlu1 %77 }
  0x85   :  { %v127_v38 = vpop.xlane.xlu2 %126  ;;  %v66_v39 = vpop.xlane.xlu0 %65  ;;  %v109_v55 = vperm.slane %v78_v37, %v96_v50 }
  0x86   :  { %v97_v57 = vperm.slane %v66_v39, %v96_v50  ;;  %v155_v11 = vperm.slane %v127_v38, %v96_v50  ;;  %v296_v39 = vld [vmem:[%s439_s4] ss:$0 sm:$0xff] }
  0x87   :  { %v110_v62 = vsel %vm98_vm1, %v109_v55, %v108_v54 }
  0x88   :  { %v99_v1 = vsel %vm98_vm1, %v97_v57, %v95_v60  ;;  %v156_v19 = vsel %vm98_vm1, %v155_v11, %v154_v8 }
  0x8c   :  { %v139_v40 = vpop.xlane.xlu1 %138 }
  0x8d   :  { %v69_v43 = vpop.xlane.xlu2 %68  ;;  %v136_v44 = vpop.xlane.xlu0 %135  ;;  %v162_v12 = vperm.slane %v139_v40, %v96_v50 }
  0x8e   :  { %v101_v59 = vperm.slane %v69_v43, %v100_v52  ;;  %v161_v13 = vperm.slane %v136_v44, %v94_v48 }
  0x90   :  { %v103_v4 = vsel %vm102_vm2, %v101_v59, %v99_v1  ;;  %v163_v20 = vsel %vm98_vm1, %v162_v12, %v161_v13 }
  0x94   :  { %v130_v49 = vpop.xlane.xlu1 %129 }
  0x95   :  { %v81_v51 = vpop.xlane.xlu0 %80  ;;  %v142_v53 = vpop.xlane.xlu2 %141  ;;  %v157_v15 = vperm.slane %v130_v49, %v100_v52 }
  0x96   :  { %v111_v58 = vperm.slane %v81_v51, %v100_v52  ;;  %v164_v16 = vperm.slane %v142_v53, %v100_v52 }
  0x97   :  { %v158_v22 = vsel %vm102_vm2, %v157_v15, %v156_v19 }
  0x98   :  { %v112_v2 = vsel %vm102_vm2, %v111_v58, %v110_v62  ;;  %v165_v23 = vsel %vm102_vm2, %v164_v16, %v163_v20 }
  0x9c   :  { %v84_v61 = vpop.xlane.xlu1 %83 }
  0x9d   :  { %v113_v63 = vperm.slane %v84_v61, %v104_v56  ;;  %v72_v0 = vpop.xlane.xlu0 %71  ;;  %v133_v9 = vpop.xlane.xlu2 %132 }
  0x9e   :  { %v105_v3 = vperm.slane %v72_v0, %v104_v56  ;;  %v159_v17 = vperm.slane %v133_v9, %v104_v56 }
  0x9f   :  { %v114_v5 = vsel %vm106_vm3, %v113_v63, %v112_v2 }
  0xa0   :  { %v107_v7 = vsel %vm106_vm3, %v105_v3, %v103_v4  ;;  %v160_v25 = vsel %vm106_vm3, %v159_v17, %v158_v22 }
  0xa1   :  { %v116_v10 = vsel %vm115_vm4, %v114_v5, %v107_v7 }
  0xa2   :  { %v118_v14 = vadd.f32 %v116_v10, %v60_v6 }
  0xa4   :  { %120 = vst.msk [vmem:[#allocation2] sm:$0x3] %vm41_vm0, %v118_v14 }
  0xa5   :  { %v145_v18 = vpop.xlane.xlu0 %144 }
  0xa6   :  { %v166_v21 = vperm.slane %v145_v18, %v104_v56 }
  0xa8   :  { %v167_v26 = vsel %vm106_vm3, %v166_v21, %v165_v23 }
  0xa9   :  { %v168_v27 = vsel %vm115_vm4, %v167_v26, %v160_v25 }
  0xaa   :  { %v170_v28 = vmax.f32 %v121_v24, %v168_v27 }
  0xab   :  { %v175_v29 = vld [vmem:[#allocation2] sm:$0x3] }
  0xac   :  { %171 = vst.msk [vmem:[#allocation3] sm:$0x3] %vm41_vm0, %v170_v28  ;;  %v176_v31 = vmul.f32 0.00390625, %v175_v29 }
  0xb3   :  { %v177_v30 = vld [vmem:[#allocation3] sm:$0x3] }
  0xb4   :  { %v179_v32 = vrot.slane %v177_v30, 6 }
  0xb6   :  { %v182_v33 = vsel %vm181_vm5, %v176_v31, %v179_v32 }
  0xb7   :  { %286 = vmatmul.msk.f32.vlgmr.msra.gmra.mxu0 %vm193_vm6, %v182_v33 }
 0x134   :  { %v214_v36 = vpop.f32.mrf.mxu0 }
 0x135   :  { %v215_v37 = vadd.f32 %v295_v35, %v214_v36 }
 0x137   :  { %v217_v38 = vmax.f32 %v215_v37, 0.0 }
 0x139   :  { %287 = vmatmul.msk.f32.vlgmr.msra.gmra.mxu1 %vm221_vm7, %v217_v38 }
 0x1b6   :  { %v242_v40 = vpop.f32.mrf.mxu1 }
 0x1b7   :  { %v243_v41 = vadd.f32 %v296_v39, %v242_v40 }
 0x1b9   :  { %v246_v42 = vrot.slane %v243_v41, 2 }
 0x1bb   :  { %v248_v43 = vadd.f32 %v246_v42, %v243_v41 }
 0x1bd   :  { %v288_v44 = vmul.f32 -1.442695, %v248_v43 }
 0x1bf   :  { %297 = vpow2.f32 %v288_v44 }
 0x1c5   :  { %v298_v45 = vpop.eup %297 }
 0x1c6   :  { %v252_v46 = vadd.f32 1.0, %v298_v45 }
 0x1c8   :  { %299 = vrcp.f32 %v252_v46  ;;  %v264_v50 = vand.u32 2147483648, %v252_v46  ;;  %v262_v52 = vand.u32 2147483647, %v252_v46  ;;  %vm258_vm9 = vweird.f32 %v252_v46 }
 0x1ca   :  { %v265_v54 = vor.u32 1.1754944e-38, %v264_v50  ;;  %vm263_vm11 = vcmp.eq.f32.partialorder %v262_v52, 8.507059e+37 }
 0x1ce   :  { %v300_v47 = vpop.eup %299 }
 0x1cf   :  { %v254_v48 = vmul.f32 %v300_v47, %v252_v46  ;;  %vm259_vm8 = vweird.f32 %v300_v47 }
 0x1d0   :  { %vm260_vm10 = vmor %vm258_vm9, %vm259_vm8 }
 0x1d1   :  { %v255_v49 = vsub.f32 1.0, %v254_v48 }
 0x1d3   :  { %v256_v51 = vmul.f32 %v300_v47, %v255_v49 }
 0x1d5   :  { %v257_v53 = vadd.f32 %v300_v47, %v256_v51 }
 0x1d7   :  { %v261_v55 = vsel %vm260_vm10, %v300_v47, %v257_v53 }
 0x1d8   :  { %v266_v56 = vsel %vm263_vm11, %v265_v54, %v261_v55 }
 0x1d9   :  { %268 = vst.msk [vmem:[#allocation7] sm:$0x3] %vm41_vm0, %v266_v56 }
 0x1da   :  { %279 = dma.vmem_to_hbm [thread:$0]  %s275_s3, 32, %s277_s13, [#allocation6]  }
 0x1db   :  { %351 = dma.done.wait [#allocation6], 32  }
 0x1dc   :  { %352 = vsyncadd [#allocation6], 4294967264 }
 0x1dd   :  { %284 = vsyncpa [#allocation5], 1 }
 0x1de   :  { %285 = vsyncpa [#allocation6], 1 }

</bundles_post_ra>
